<compile_context>
chip_gen: v5e
topology: v5e:2x2
jax: 0.10.0
libtpu: 0.0.40
codegen_flags: <defaults>
</compile_context>

<pallas_src>
import functools
import math

import jax
import jax.numpy as jnp
import numpy as np
from jax.experimental import pallas as pl
from jax.experimental.pallas import tpu as pltpu


# ---------------------------------------------------------------------------
# Host-side helpers (numpy): Gaussian taps and banded conv matrices.
# ---------------------------------------------------------------------------
def _gaussian_1d(window_size: int, sigma: float = 1.5) -> np.ndarray:
    """Same construction as the torch `gaussian` helper (normalized 1-D taps)."""
    g = np.array(
        [math.exp(-((x - window_size // 2) ** 2) / float(2 * sigma ** 2))
         for x in range(window_size)],
        dtype=np.float64,
    )
    return g / g.sum()


def _band_matrix(n: int, w1d: np.ndarray) -> np.ndarray:
    """(n, n) banded matrix M[r, i] = w1d[i - r + p] (zero outside the band).

    Left-multiplying by M applies the 1-D Gaussian correlation with zero
    padding p = window_size // 2 along that axis ('same' output size), i.e. it
    reproduces F.conv2d's padded depthwise conv along one dimension.
    """
    ws = w1d.shape[0]
    p = ws // 2
    idx = np.arange(n)
    diff = idx[None, :] - idx[:, None] + p          # i - r + p
    valid = (diff >= 0) & (diff < ws)
    taps = w1d[np.clip(diff, 0, ws - 1)]
    return np.where(valid, taps, 0.0).astype(np.float32)


def _pick_chunk(n_imgs: int, H: int, W: int) -> int:
    """Number of images per grid step (must divide n_imgs).

    Keeps the block-diagonal W-pass matrix (TB*W)^2 and the per-block inputs
    comfortably inside VMEM while preferring lane-aligned (multiple-of-128)
    blocks for dense vreg/lane utilization.
    """
    LANE_CAP = 512                    # kron(I_TB, G_w) <= 512*512*4 B = 1 MiB
    BYTES_CAP = 4 * 1024 * 1024       # per input block
    best = None
    for d in range(1, n_imgs + 1):
        if n_imgs % d:
            continue
        if d != n_imgs and (d * W) % 128 != 0:
            continue                  # lane-aligned blocks unless full extent
        if d * W > LANE_CAP or 4 * H * d * W > BYTES_CAP:
            continue
        best = d
    if best is None:
        # TODO(synk): halo-tiled W blocking for very large images (v7x 64 MiB VMEM).
        best = n_imgs
    return best


# ---------------------------------------------------------------------------
# Pallas kernel: one grid step = one chunk of TB images, laid out (H, TB*W).
# ---------------------------------------------------------------------------
def _ssim_kernel(gh_ref, gw_ref, x1_ref, x2_ref, colsum_ref):
    """
    gh_ref     : (H, H)        f32 VMEM  banded Gaussian, H (row) pass
    gw_ref     : (TB*W, TB*W)  f32 VMEM  kron(I_TB, banded Gaussian), W pass
    x1_ref     : (H, TB*W)     f32 VMEM  img1 chunk (images on the lane axis)
    x2_ref     : (H, TB*W)     f32 VMEM  img2 chunk
    colsum_ref : (1, TB*W)     f32 VMEM  per-column sums of the SSIM map
    """
    x1 = x1_ref[...]
    x2 = x2_ref[...]
    gh = gh_ref[...]
    gw = gw_ref[...]

    def gconv(q):
        # Separable Gaussian conv as two MXU matmuls; the zero padding of the
        # original F.conv2d(padding=ws//2) is already encoded in gh / gw.
        y = jnp.dot(gh, q, preferred_element_type=jnp.float32)     # H pass
        return jnp.dot(y, gw, preferred_element_type=jnp.float32)  # W pass

    # Product planes are formed exactly once each (then convolved on the MXU).
    mu1 = gconv(x1)
    mu2 = gconv(x2)
    s11 = gconv(x1 * x1)
    s22 = gconv(x2 * x2)
    s12 = gconv(x1 * x2)

    mu1_sq = mu1 * mu1
    mu2_sq = mu2 * mu2
    mu1_mu2 = mu1 * mu2
    sigma1_sq = s11 - mu1_sq
    sigma2_sq = s22 - mu2_sq
    sigma12 = s12 - mu1_mu2

    C1 = jnp.float32(0.01 ** 2)
    C2 = jnp.float32(0.03 ** 2)
    ssim_map = ((2.0 * mu1_mu2 + C1) * (2.0 * sigma12 + C2)) / (
        (mu1_sq + mu2_sq + C1) * (sigma1_sq + sigma2_sq + C2))

    # Lane-dense partial output: per-column sums only; per-image / global
    # reductions are finished in the wrapper (keeps the grid axis parallel).
    colsum_ref[...] = jnp.sum(ssim_map, axis=0, keepdims=True)


# ---------------------------------------------------------------------------
# Wrapper: matches the PyTorch SSIM module's forward.
# ---------------------------------------------------------------------------
def ssim_pallas(img1: jax.Array, img2: jax.Array,
                window_size: int = 11, size_average: bool = True) -> jax.Array:
    assert img1.shape == img2.shape and img1.ndim == 4
    B, C, H, W = img1.shape
    BC = B * C
    TB = _pick_chunk(BC, H, W)
    n_chunks = BC // TB
    tbw = TB * W

    w1d = _gaussian_1d(window_size)
    gh = jnp.asarray(_band_matrix(H, w1d))                            # (H, H)
    gw = jnp.asarray(np.kron(np.eye(TB, dtype=np.float32),
                             _band_matrix(W, w1d)))                   # (TB*W, TB*W)

    # Lane-dense layout: (B, C, H, W) -> (H, B*C*W); images sit on the lane axis.
    x1 = jnp.transpose(img1.astype(jnp.float32), (2, 0, 1, 3)).reshape(H, BC * W)
    x2 = jnp.transpose(img2.astype(jnp.float32), (2, 0, 1, 3)).reshape(H, BC * W)

    col_sums = pl.pallas_call(
        _ssim_kernel,
        out_shape=jax.ShapeDtypeStruct((1, BC * W), jnp.float32),
        grid=(n_chunks,),
        in_specs=[
            pl.BlockSpec((H, H), lambda i: (0, 0)),          # G_h
            pl.BlockSpec((tbw, tbw), lambda i: (0, 0)),      # kron(I_TB, G_w)
            pl.BlockSpec((H, tbw), lambda i: (0, i)),        # img1 chunk
            pl.BlockSpec((H, tbw), lambda i: (0, i)),        # img2 chunk
        ],
        out_specs=pl.BlockSpec((1, tbw), lambda i: (0, i)),  # per-chunk partials
        compiler_params=pltpu.CompilerParams(
            dimension_semantics=("parallel",)),              # shardable (v7x 2 TCs)
    )(gh, gw, x1, x2)

    per_image = col_sums.reshape(B, C, W).sum(axis=-1)       # (B, C) ssim_map sums
    if size_average:
        return per_image.sum() / jnp.float32(BC * H * W)
    return per_image.sum(axis=1) / jnp.float32(C * H * W)    # per-sample means


# ---------------------------------------------------------------------------
# float64 numpy ground truth (mirrors the PyTorch module exactly).
# ---------------------------------------------------------------------------
def _ssim_reference_np(img1, img2, window_size=11, size_average=True):
    img1 = np.asarray(img1, np.float64)
    img2 = np.asarray(img2, np.float64)
    _, _, H, W = img1.shape
    p = window_size // 2
    w2d = np.outer(_gaussian_1d(window_size), _gaussian_1d(window_size))

    def conv(x):
        xp = np.pad(x, ((0, 0), (0, 0), (p, p), (p, p)))
        out = np.zeros_like(x)
        for di in range(window_size):
            for dj in range(window_size):
                out += w2d[di, dj] * xp[:, :, di:di + H, dj:dj + W]
        return out

    mu1, mu2 = conv(img1), conv(img2)
    mu1_sq, mu2_sq, mu1_mu2 = mu1 ** 2, mu2 ** 2, mu1 * mu2
    sigma1_sq = conv(img1 * img1) - mu1_sq
    sigma2_sq = conv(img2 * img2) - mu2_sq
    sigma12 = conv(img1 * img2) - mu1_mu2
    C1, C2 = 0.01 ** 2, 0.03 ** 2
    ssim_map = ((2 * mu1_mu2 + C1) * (2 * sigma12 + C2)) / (
        (mu1_sq + mu2_sq + C1) * (sigma1_sq + sigma2_sq + C2))
    if size_average:
        return ssim_map.mean()
    return ssim_map.mean(axis=(1, 2, 3))


if __name__ == "__main__":
    key = jax.random.PRNGKey(0)
    k1, k2 = jax.random.split(key)
    B, C, H, W = 2, 4, 16, 16
    img1 = jax.random.uniform(k1, (B, C, H, W), dtype=jnp.float32)
    img2 = jax.random.uniform(k2, (B, C, H, W), dtype=jnp.float32)

    # size_average=True (module default): single scalar mean.
    out = jax.block_until_ready(jax.jit(ssim_pallas)(img1, img2))
    ref = _ssim_reference_np(np.asarray(img1), np.asarray(img2))
    assert np.allclose(np.asarray(out), ref, rtol=1e-4, atol=1e-4), (
        f"size_average=True mismatch: pallas={float(out)} ref={float(ref)}")

    # size_average=False: per-sample means (previously a TODO, now supported).
    out_ps = jax.block_until_ready(
        jax.jit(functools.partial(ssim_pallas, size_average=False))(img1, img2))
    ref_ps = _ssim_reference_np(np.asarray(img1), np.asarray(img2),
                                size_average=False)
    assert np.allclose(np.asarray(out_ps), ref_ps, rtol=1e-4, atol=1e-4), (
        f"size_average=False mismatch: pallas={np.asarray(out_ps)} ref={ref_ps}")

    print("KERNEL_OK")
</pallas_src>

<mosaic_0001>
module attributes {stable_mosaic.version = 11 : i64} {
  func.func @_ssim_kernel(%arg0: i32, %arg1: memref<16x16xf32, #tpu.memory_space<vmem>>, %arg2: memref<128x128xf32, #tpu.memory_space<vmem>>, %arg3: memref<16x128xf32, #tpu.memory_space<vmem>>, %arg4: memref<16x128xf32, #tpu.memory_space<vmem>>, %arg5: memref<1x128xf32, #tpu.memory_space<vmem>>) attributes {dimension_semantics = [#tpu.dimension_semantics<parallel>], iteration_bounds = array<i64: 1>, scalar_prefetch = 0 : i64, scratch_operands = 0 : i64, tpu.core_type = #tpu.core_type<tc>, window_params = [{pipeline_mode = #tpu.pipeline_mode<synchronous>, transform_indices = @transform_0, window_bounds = array<i64: 16, 16>}, {pipeline_mode = #tpu.pipeline_mode<synchronous>, transform_indices = @transform_1, window_bounds = array<i64: 128, 128>}, {transform_indices = @transform_2, window_bounds = array<i64: 16, 128>}, {transform_indices = @transform_3, window_bounds = array<i64: 16, 128>}, {transform_indices = @transform_4, window_bounds = array<i64: 1, 128>}]} {
    %c0 = arith.constant 0 : index
    %c0_0 = arith.constant 0 : index
    %0 = vector.load %arg3[%c0, %c0_0] : memref<16x128xf32, #tpu.memory_space<vmem>>, vector<16x128xf32>
    %c0_1 = arith.constant 0 : index
    %c0_2 = arith.constant 0 : index
    %1 = vector.load %arg4[%c0_1, %c0_2] : memref<16x128xf32, #tpu.memory_space<vmem>>, vector<16x128xf32>
    %c0_3 = arith.constant 0 : index
    %c0_4 = arith.constant 0 : index
    %2 = vector.load %arg1[%c0_3, %c0_4] : memref<16x16xf32, #tpu.memory_space<vmem>>, vector<16x16xf32>
    %c0_5 = arith.constant 0 : index
    %c0_6 = arith.constant 0 : index
    %3 = vector.load %arg2[%c0_5, %c0_6] : memref<128x128xf32, #tpu.memory_space<vmem>>, vector<128x128xf32>
    %cst = arith.constant dense<0.000000e+00> : vector<16x128xf32>
    %4 = tpu.matmul %2, %0, %cst {dimension_numbers = #tpu.dot_dimension_numbers<[1], [0], [0], [1], [0, 0, 1, 1], [], []>} : vector<16x16xf32>, vector<16x128xf32>, vector<16x128xf32> -> vector<16x128xf32>
    %cst_7 = arith.constant dense<0.000000e+00> : vector<16x128xf32>
    %5 = tpu.matmul %4, %3, %cst_7 {dimension_numbers = #tpu.dot_dimension_numbers<[1], [0], [0], [1], [0, 0, 1, 1], [], []>} : vector<16x128xf32>, vector<128x128xf32>, vector<16x128xf32> -> vector<16x128xf32>
    %cst_8 = arith.constant dense<0.000000e+00> : vector<16x128xf32>
    %6 = tpu.matmul %2, %1, %cst_8 {dimension_numbers = #tpu.dot_dimension_numbers<[1], [0], [0], [1], [0, 0, 1, 1], [], []>} : vector<16x16xf32>, vector<16x128xf32>, vector<16x128xf32> -> vector<16x128xf32>
    %cst_9 = arith.constant dense<0.000000e+00> : vector<16x128xf32>
    %7 = tpu.matmul %6, %3, %cst_9 {dimension_numbers = #tpu.dot_dimension_numbers<[1], [0], [0], [1], [0, 0, 1, 1], [], []>} : vector<16x128xf32>, vector<128x128xf32>, vector<16x128xf32> -> vector<16x128xf32>
    %8 = arith.mulf %0, %0 : vector<16x128xf32>
    %cst_10 = arith.constant dense<0.000000e+00> : vector<16x128xf32>
    %9 = tpu.matmul %2, %8, %cst_10 {dimension_numbers = #tpu.dot_dimension_numbers<[1], [0], [0], [1], [0, 0, 1, 1], [], []>} : vector<16x16xf32>, vector<16x128xf32>, vector<16x128xf32> -> vector<16x128xf32>
    %cst_11 = arith.constant dense<0.000000e+00> : vector<16x128xf32>
    %10 = tpu.matmul %9, %3, %cst_11 {dimension_numbers = #tpu.dot_dimension_numbers<[1], [0], [0], [1], [0, 0, 1, 1], [], []>} : vector<16x128xf32>, vector<128x128xf32>, vector<16x128xf32> -> vector<16x128xf32>
    %11 = arith.mulf %1, %1 : vector<16x128xf32>
    %cst_12 = arith.constant dense<0.000000e+00> : vector<16x128xf32>
    %12 = tpu.matmul %2, %11, %cst_12 {dimension_numbers = #tpu.dot_dimension_numbers<[1], [0], [0], [1], [0, 0, 1, 1], [], []>} : vector<16x16xf32>, vector<16x128xf32>, vector<16x128xf32> -> vector<16x128xf32>
    %cst_13 = arith.constant dense<0.000000e+00> : vector<16x128xf32>
    %13 = tpu.matmul %12, %3, %cst_13 {dimension_numbers = #tpu.dot_dimension_numbers<[1], [0], [0], [1], [0, 0, 1, 1], [], []>} : vector<16x128xf32>, vector<128x128xf32>, vector<16x128xf32> -> vector<16x128xf32>
    %14 = arith.mulf %0, %1 : vector<16x128xf32>
    %cst_14 = arith.constant dense<0.000000e+00> : vector<16x128xf32>
    %15 = tpu.matmul %2, %14, %cst_14 {dimension_numbers = #tpu.dot_dimension_numbers<[1], [0], [0], [1], [0, 0, 1, 1], [], []>} : vector<16x16xf32>, vector<16x128xf32>, vector<16x128xf32> -> vector<16x128xf32>
    %cst_15 = arith.constant dense<0.000000e+00> : vector<16x128xf32>
    %16 = tpu.matmul %15, %3, %cst_15 {dimension_numbers = #tpu.dot_dimension_numbers<[1], [0], [0], [1], [0, 0, 1, 1], [], []>} : vector<16x128xf32>, vector<128x128xf32>, vector<16x128xf32> -> vector<16x128xf32>
    %17 = arith.mulf %5, %5 : vector<16x128xf32>
    %18 = arith.mulf %7, %7 : vector<16x128xf32>
    %19 = arith.mulf %5, %7 : vector<16x128xf32>
    %20 = arith.subf %10, %17 : vector<16x128xf32>
    %21 = arith.subf %13, %18 : vector<16x128xf32>
    %22 = arith.subf %16, %19 : vector<16x128xf32>
    %cst_16 = arith.constant 2.000000e+00 : f32
    %23 = vector.broadcast %cst_16 : f32 to vector<16x128xf32>
    %24 = arith.mulf %23, %19 : vector<16x128xf32>
    %cst_17 = arith.constant 9.99999974E-5 : f32
    %25 = vector.broadcast %cst_17 : f32 to vector<16x128xf32>
    %26 = arith.addf %24, %25 : vector<16x128xf32>
    %cst_18 = arith.constant 2.000000e+00 : f32
    %27 = vector.broadcast %cst_18 : f32 to vector<16x128xf32>
    %28 = arith.mulf %27, %22 : vector<16x128xf32>
    %cst_19 = arith.constant 8.99999984E-4 : f32
    %29 = vector.broadcast %cst_19 : f32 to vector<16x128xf32>
    %30 = arith.addf %28, %29 : vector<16x128xf32>
    %31 = arith.mulf %26, %30 : vector<16x128xf32>
    %32 = arith.addf %17, %18 : vector<16x128xf32>
    %cst_20 = arith.constant 9.99999974E-5 : f32
    %33 = vector.broadcast %cst_20 : f32 to vector<16x128xf32>
    %34 = arith.addf %32, %33 : vector<16x128xf32>
    %35 = arith.addf %20, %21 : vector<16x128xf32>
    %cst_21 = arith.constant 8.99999984E-4 : f32
    %36 = vector.broadcast %cst_21 : f32 to vector<16x128xf32>
    %37 = arith.addf %35, %36 : vector<16x128xf32>
    %38 = arith.mulf %34, %37 : vector<16x128xf32>
    %39 = arith.divf %31, %38 : vector<16x128xf32>
    %cst_22 = arith.constant dense<0.000000e+00> : vector<128xf32>
    %40 = vector.multi_reduction <add>, %39, %cst_22 [0] : vector<16x128xf32> to vector<128xf32>
    %41 = vector.shape_cast %40 : vector<128xf32> to vector<1x128xf32>
    %c0_23 = arith.constant 0 : index
    %c0_24 = arith.constant 0 : index
    %42 = vector.load %arg5[%c0_23, %c0_24] : memref<1x128xf32, #tpu.memory_space<vmem>>, vector<1x128xf32>
    tpu.vector_store %arg5[%c0_23, %c0_24], %41 {strides = array<i32>} : memref<1x128xf32, #tpu.memory_space<vmem>>, vector<1x128xf32>,
    return
  }
  func.func @transform_0(%arg0: i32) -> (i32, i32) {
    %c0_i32 = arith.constant 0 : i32
    %c0_i32_0 = arith.constant 0 : i32
    %c0_i32_1 = arith.constant 0 : i32
    return %c0_i32, %c0_i32_0 : i32, i32
  }
  func.func @transform_1(%arg0: i32) -> (i32, i32) {
    %c0_i32 = arith.constant 0 : i32
    %c0_i32_0 = arith.constant 0 : i32
    %c0_i32_1 = arith.constant 0 : i32
    return %c0_i32, %c0_i32_0 : i32, i32
  }
  func.func @transform_2(%arg0: i32) -> (i32, i32) {
    %c0_i32 = arith.constant 0 : i32
    %c0_i32_0 = arith.constant 0 : i32
    return %c0_i32, %arg0 : i32, i32
  }
  func.func @transform_3(%arg0: i32) -> (i32, i32) {
    %c0_i32 = arith.constant 0 : i32
    %c0_i32_0 = arith.constant 0 : i32
    return %c0_i32, %arg0 : i32, i32
  }
  func.func @transform_4(%arg0: i32) -> (i32, i32) {
    %c0_i32 = arith.constant 0 : i32
    %c0_i32_0 = arith.constant 0 : i32
    return %c0_i32, %arg0 : i32, i32
  }
}

</mosaic_0001>

<bundles_post_ra>
// kernel: ssim_pallas.1
= control target key start
LH: loop header
LB: loop body
LE: loop exit
PB: predicated region body
PF: predicated region fallthrough
CT: control target
= control target key end

     0   :  { %vm39_vm0 = vcmask 130048   ;;  %s581_s2 = inlined_call_operand.vmem [shape: f32[16,128], index: 2, kind: input, shape index: {}]   ;;  %s582_s0 = inlined_call_operand.vmem [shape: f32[16,16], index: 0, kind: input, shape index: {}]   ;;  %s583_s3 = inlined_call_operand.vmem [shape: f32[16,128], index: 3, kind: input, shape index: {}]   ;;  %s584_s1 = inlined_call_operand.vmem [shape: f32[128,128], index: 1, kind: input, shape index: {}]   ;;  %s585_s4 = inlined_call_operand.vmem [shape: f32[1,128], index: 4, kind: output, shape index: {}]  }
   0x1   :  { %v398_v0 = vld [vmem:[%s581_s2 + $0x8] sm:$0xff]  ;;  %v403_v1 = vld [vmem:[%s581_s2] sm:$0xff]  ;;  %v423_v6 = vld [vmem:[%s584_s1 + $0x78] sm:$0xff] }
   0x2   :  { %60 = vmatpush.msra.mxu2 %v398_v0  ;;  %v139_v2 = vmul.f32 %v398_v0, %v398_v0  ;;  %v411_v3 = vld [vmem:[%s582_s0] sm:$0xff]  ;;  %v138_v4 = vmul.f32 %v403_v1, %v403_v1  ;;  %v418_v5 = vld [vmem:[%s583_s3 + $0x8] sm:$0xff]  ;;  %v431_v8 = vld [vmem:[%s584_s1 + $0x70] sm:$0xff]  ;;  %69 = vmatpush.msra.mxu1 %v423_v6 }
   0x3   :  { %v187_v7 = vmul.f32 %v418_v5, %v418_v5  ;;  %v438_v9 = vld [vmem:[%s583_s3] sm:$0xff]  ;;  %v447_v11 = vld [vmem:[%s584_s1 + $0x68] sm:$0xff]  ;;  %v468_v14 = vld [vmem:[%s584_s1 + $0x58] sm:$0xff]  ;;  %115 = vmatpush.msra.mxu3 %v423_v6  ;;  %v235_v26 = vmul.f32 %v418_v5, %v398_v0 }
   0x4   :  { %61 = vmatpush.msra.mxu2 %v403_v1  ;;  %154 = vmatpush.msra.mxu0 %v139_v2  ;;  %v186_v10 = vmul.f32 %v438_v9, %v438_v9  ;;  %v456_v12 = vld [vmem:[%s584_s1 + $0x60] sm:$0xff]  ;;  %v463_v13 = vld [vmem:[%s582_s0 + $0x8] sm:$0xff]  ;;  %v476_v15 = vld [vmem:[%s584_s1 + $0x50] sm:$0xff]  ;;  %v234_v27 = vmul.f32 %v438_v9, %v403_v1 }
   0x5   :  { %356 = vmatmul.msk.f32.vlgmr.msra.gmra.mxu2 %vm39_vm0, %v411_v3  ;;  %70 = vmatpush.msra.mxu1 %v431_v8  ;;  %v487_v16 = vld [vmem:[%s584_s1 + $0x48] sm:$0xff]  ;;  %v497_v17 = vld [vmem:[%s584_s1 + $0x40] sm:$0xff]  ;;  %v506_v18 = vld [vmem:[%s584_s1 + $0x38] sm:$0xff] }
   0x6   :  { %106 = vmatpush.msrb.mxu2 %v418_v5  ;;  %155 = vmatpush.msra.mxu0 %v138_v4  ;;  %v29_v19 = vld [vmem:[%s584_s1 + $0x30] sm:$0xff]  ;;  %v28_v20 = vld [vmem:[%s584_s1 + $0x28] sm:$0xff]  ;;  %v27_v21 = vld [vmem:[%s584_s1 + $0x20] sm:$0xff] }
   0x7   :  { %360 = vmatmul.msk.f32.vlgmr.msra.gmra.mxu0 %vm39_vm0, %v411_v3  ;;  %71 = vmatpush.msra.mxu1 %v447_v11  ;;  %v26_v22 = vld [vmem:[%s584_s1 + $0x18] sm:$0xff]  ;;  %v25_v23 = vld [vmem:[%s584_s1 + $0x10] sm:$0xff]  ;;  %v24_v24 = vld [vmem:[%s584_s1 + $0x8] sm:$0xff] }
   0x8   :  { %107 = vmatpush.msrb.mxu2 %v438_v9  ;;  %202 = vmatpush.msrb.mxu0 %v187_v7  ;;  %v23_v25 = vld [vmem:[%s584_s1] sm:$0xff] }
   0x9   :  { %72 = vmatpush.msra.mxu1 %v456_v12  ;;  %116 = vmatpush.msra.mxu3 %v431_v8 }
   0xa   :  { %163 = vmatpush.msra.mxu2 %v423_v6  ;;  %203 = vmatpush.msrb.mxu0 %v186_v10 }
   0xb   :  { %73 = vmatpush.msra.mxu1 %v468_v14  ;;  %117 = vmatpush.msra.mxu3 %v447_v11 }
   0xc   :  { %164 = vmatpush.msra.mxu2 %v431_v8  ;;  %259 = vmatpush.msra.mxu0 %v423_v6 }
   0xd   :  { %357 = vmatmul.msk.f32.gmra.mxu2 %vm39_vm0, %v463_v13  ;;  %74 = vmatpush.msra.mxu1 %v476_v15 }
   0xe   :  { %165 = vmatpush.msra.mxu2 %v447_v11  ;;  %118 = vmatpush.msra.mxu3 %v456_v12 }
   0xf   :  { %361 = vmatmul.msk.f32.gmra.mxu0 %vm39_vm0, %v463_v13  ;;  %75 = vmatpush.msra.mxu1 %v487_v16 }
  0x10   :  { %166 = vmatpush.msra.mxu2 %v456_v12  ;;  %260 = vmatpush.msra.mxu0 %v431_v8 }
  0x11   :  { %119 = vmatpush.msra.mxu3 %v468_v14  ;;  %76 = vmatpush.msra.mxu1 %v497_v17 }
  0x12   :  { %167 = vmatpush.msra.mxu2 %v468_v14  ;;  %261 = vmatpush.msra.mxu0 %v447_v11 }
  0x13   :  { %120 = vmatpush.msra.mxu3 %v476_v15  ;;  %77 = vmatpush.msra.mxu1 %v506_v18 }
  0x14   :  { %168 = vmatpush.msra.mxu2 %v476_v15  ;;  %262 = vmatpush.msra.mxu0 %v456_v12 }
  0x15   :  { %358 = vmatmul.msk.f32.vlgmr.msrb.gmra.mxu2 %vm39_vm0, %v411_v3  ;;  %121 = vmatpush.msra.mxu3 %v487_v16 }
  0x16   :  { %169 = vmatpush.msra.mxu2 %v487_v16  ;;  %78 = vmatpush.msra.mxu1 %v29_v19 }
  0x17   :  { %362 = vmatmul.msk.f32.vlgmr.msrb.gmra.mxu0 %vm39_vm0, %v411_v3  ;;  %122 = vmatpush.msra.mxu3 %v497_v17 }
  0x18   :  { %170 = vmatpush.msra.mxu2 %v497_v17  ;;  %79 = vmatpush.msra.mxu1 %v28_v20 }
  0x19   :  { %123 = vmatpush.msra.mxu3 %v506_v18  ;;  %263 = vmatpush.msra.mxu0 %v468_v14 }
  0x1a   :  { %171 = vmatpush.msra.mxu2 %v506_v18  ;;  %80 = vmatpush.msra.mxu1 %v27_v21 }
  0x1b   :  { %124 = vmatpush.msra.mxu3 %v29_v19  ;;  %264 = vmatpush.msra.mxu0 %v476_v15 }
  0x1c   :  { %172 = vmatpush.msra.mxu2 %v29_v19  ;;  %81 = vmatpush.msra.mxu1 %v26_v22 }
  0x1d   :  { %359 = vmatmul.msk.f32.gmra.mxu2 %vm39_vm0, %v463_v13  ;;  %125 = vmatpush.msra.mxu3 %v28_v20 }
  0x1e   :  { %173 = vmatpush.msra.mxu2 %v28_v20  ;;  %82 = vmatpush.msra.mxu1 %v25_v23 }
  0x1f   :  { %363 = vmatmul.msk.f32.gmra.mxu0 %vm39_vm0, %v463_v13  ;;  %126 = vmatpush.msra.mxu3 %v27_v21 }
  0x20   :  { %174 = vmatpush.msra.mxu2 %v27_v21  ;;  %83 = vmatpush.msra.mxu1 %v24_v24 }
  0x21   :  { %127 = vmatpush.msra.mxu3 %v26_v22  ;;  %265 = vmatpush.msra.mxu0 %v487_v16 }
  0x22   :  { %175 = vmatpush.msra.mxu2 %v26_v22  ;;  %84 = vmatpush.msra.mxu1 %v23_v25 }
  0x23   :  { %128 = vmatpush.msra.mxu3 %v25_v23  ;;  %266 = vmatpush.msra.mxu0 %v497_v17 }
  0x24   :  { %176 = vmatpush.msra.mxu2 %v25_v23  ;;  %211 = vmatpush.msrb.mxu1 %v423_v6 }
  0x25   :  { %129 = vmatpush.msra.mxu3 %v24_v24  ;;  %267 = vmatpush.msra.mxu0 %v506_v18 }
  0x26   :  { %177 = vmatpush.msra.mxu2 %v24_v24  ;;  %212 = vmatpush.msrb.mxu1 %v431_v8 }
  0x27   :  { %130 = vmatpush.msra.mxu3 %v23_v25  ;;  %268 = vmatpush.msra.mxu0 %v29_v19 }
  0x28   :  { %178 = vmatpush.msra.mxu2 %v23_v25  ;;  %213 = vmatpush.msrb.mxu1 %v447_v11 }
  0x29   :  { %269 = vmatpush.msra.mxu0 %v28_v20  ;;  %250 = vmatpush.msrb.mxu3 %v235_v26 }
  0x2a   :  { %214 = vmatpush.msrb.mxu1 %v456_v12 }
  0x2b   :  { %270 = vmatpush.msra.mxu0 %v27_v21  ;;  %251 = vmatpush.msrb.mxu3 %v234_v27 }
  0x2c   :  { %215 = vmatpush.msrb.mxu1 %v468_v14 }
  0x2d   :  { %271 = vmatpush.msra.mxu0 %v26_v22 }
  0x2e   :  { %216 = vmatpush.msrb.mxu1 %v476_v15 }
  0x2f   :  { %272 = vmatpush.msra.mxu0 %v25_v23 }
  0x30   :  { %217 = vmatpush.msrb.mxu1 %v487_v16 }
  0x31   :  { %273 = vmatpush.msra.mxu0 %v24_v24 }
  0x32   :  { %218 = vmatpush.msrb.mxu1 %v497_v17 }
  0x33   :  { %274 = vmatpush.msra.mxu0 %v23_v25 }
  0x34   :  { %219 = vmatpush.msrb.mxu1 %v506_v18 }
  0x36   :  { %220 = vmatpush.msrb.mxu1 %v29_v19 }
  0x38   :  { %221 = vmatpush.msrb.mxu1 %v28_v20 }
  0x3a   :  { %222 = vmatpush.msrb.mxu1 %v27_v21 }
  0x3c   :  { %223 = vmatpush.msrb.mxu1 %v26_v22 }
  0x3e   :  { %224 = vmatpush.msrb.mxu1 %v25_v23 }
  0x40   :  { %225 = vmatpush.msrb.mxu1 %v24_v24 }
  0x42   :  { %226 = vmatpush.msrb.mxu1 %v23_v25 }
  0x84   :  { %v157_v28 = vpop.f32.mrf.mxu0 }
  0x85   :  { %179 = vmatmul.f32.vlgmr.msra.gmra.mxu2 %v157_v28 }
  0x88   :  { %v63_v29 = vpop.f32.mrf.mxu2 }
  0x89   :  { %85 = vmatmul.f32.vlgmr.msra.gmra.mxu1 %v63_v29 }
  0x8c   :  { %v160_v30 = vpop.f32.mrf.mxu0 }
  0x8d   :  { %182 = vmatmul.f32.gmra.mxu2 %v160_v30 }
  0x90   :  { %v66_v31 = vpop.f32.mrf.mxu2 }
  0x91   :  { %88 = vmatmul.f32.gmra.mxu1 %v66_v31 }
  0x94   :  { %v205_v32 = vpop.f32.mrf.mxu0 }
  0x98   :  { %v109_v33 = vpop.f32.mrf.mxu2 }
  0x99   :  { %131 = vmatmul.f32.vlgmr.msra.gmra.mxu3 %v109_v33  ;;  %227 = vmatmul.f32.vlgmr.msrb.gmra.mxu1 %v205_v32 }
  0x9c   :  { %v208_v34 = vpop.f32.mrf.mxu0 }
  0xa0   :  { %v112_v35 = vpop.f32.mrf.mxu2 }
  0xa1   :  { %134 = vmatmul.f32.gmra.mxu3 %v112_v35  ;;  %230 = vmatmul.f32.gmra.mxu1 %v208_v34 }
  0xa9   :  { %364 = vmatmul.msk.f32.vlgmr.msrb.gmra.mxu3 %vm39_vm0, %v411_v3 }
  0xb1   :  { %365 = vmatmul.msk.f32.gmra.mxu3 %vm39_vm0, %v463_v13 }
 0x106   :  { %v86_v40 = vpop.f32.mrf.mxu1 }
 0x107   :  { %v282_v46 = vmul.f32 %v86_v40, %v86_v40 }
 0x108   :  { %v180_v43 = vpop.f32.mrf.mxu2 }
 0x109   :  { %v288_v52 = vsub.f32 %v180_v43, %v282_v46 }
 0x10e   :  { %v89_v41 = vpop.f32.mrf.mxu1 }
 0x10f   :  { %v283_v48 = vmul.f32 %v89_v41, %v89_v41 }
 0x110   :  { %v183_v49 = vpop.f32.mrf.mxu2 }
 0x111   :  { %v289_v53 = vsub.f32 %v183_v49, %v283_v48 }
 0x116   :  { %v228_v42 = vpop.f32.mrf.mxu1 }
 0x11c   :  { %v132_v36 = vpop.f32.mrf.mxu3 }
 0x11d   :  { %v284_v44 = vmul.f32 %v132_v36, %v132_v36  ;;  %v286_v4 = vmul.f32 %v132_v36, %v86_v40 }
 0x11e   :  { %v231_v47 = vpop.f32.mrf.mxu1 }
 0x11f   :  { %v290_v50 = vsub.f32 %v228_v42, %v284_v44  ;;  %v304_v56 = vadd.f32 %v284_v44, %v282_v46  ;;  %v294_v13 = vmul.f32 2.0, %v286_v4 }
 0x121   :  { %v308_v54 = vadd.f32 %v290_v50, %v288_v52  ;;  %v306_v60 = vadd.f32 0.0001, %v304_v56  ;;  %v296_v20 = vadd.f32 0.0001, %v294_v13 }
 0x123   :  { %v310_v58 = vadd.f32 0.0009, %v308_v54 }
 0x124   :  { %v135_v37 = vpop.f32.mrf.mxu3 }
 0x125   :  { %v285_v45 = vmul.f32 %v135_v37, %v135_v37  ;;  %v312_v62 = vmul.f32 %v310_v58, %v306_v60  ;;  %v287_v9 = vmul.f32 %v135_v37, %v89_v41 }
 0x127   :  { %v291_v51 = vsub.f32 %v231_v47, %v285_v45  ;;  %v305_v57 = vadd.f32 %v285_v45, %v283_v48  ;;  %366 = vrcp.f32 %v312_v62  ;;  %v295_v14 = vmul.f32 2.0, %v287_v9 }
 0x128   :  { %vm319_vm3 = vweird.f32 %v312_v62  ;;  %v325_v21 = vand.u32 2147483648, %v312_v62  ;;  %v323_v24 = vand.u32 2147483647, %v312_v62 }
 0x129   :  { %v309_v55 = vadd.f32 %v291_v51, %v289_v53  ;;  %v307_v61 = vadd.f32 0.0001, %v305_v57  ;;  %v297_v27 = vadd.f32 0.0001, %v295_v14 }
 0x12a   :  { %v326_v32 = vor.u32 1.1754944e-38, %v325_v21  ;;  %vm324_vm7 = vcmp.eq.f32.partialorder %v323_v24, 8.507059e+37 }
 0x12b   :  { %v311_v59 = vadd.f32 0.0009, %v309_v55 }
 0x12c   :  { %v253_v38 = vpop.f32.mrf.mxu3 }
 0x12d   :  { %275 = vmatmul.f32.vlgmr.msra.gmra.mxu0 %v253_v38  ;;  %v313_v63 = vmul.f32 %v311_v59, %v307_v61  ;;  %v367_v0 = vpop.eup %366 }
 0x12e   :  { %v315_v2 = vmul.f32 %v367_v0, %v312_v62  ;;  %vm320_vm1 = vweird.f32 %v367_v0 }
 0x12f   :  { %368 = vrcp.f32 %v313_v63  ;;  %v340_v22 = vand.u32 2147483648, %v313_v63  ;;  %vm572_vm4 = vmor %vm319_vm3, %vm320_vm1  ;;  %vm334_vm5 = vweird.f32 %v313_v63  ;;  %v338_v26 = vand.u32 2147483647, %v313_v63 }
 0x130   :  { %v316_v6 = vsub.f32 1.0, %v315_v2 }
 0x131   :  { %v341_v33 = vor.u32 1.1754944e-38, %v340_v22  ;;  %vm339_vm8 = vcmp.eq.f32.partialorder %v338_v26, 8.507059e+37 }
 0x132   :  { %v317_v10 = vmul.f32 %v367_v0, %v316_v6 }
 0x134   :  { %v256_v39 = vpop.f32.mrf.mxu3  ;;  %v318_v15 = vadd.f32 %v367_v0, %v317_v10 }
 0x135   :  { %278 = vmatmul.f32.gmra.mxu0 %v256_v39  ;;  %v369_v1 = vpop.eup %368 }
 0x136   :  { %v330_v3 = vmul.f32 %v369_v1, %v313_v63  ;;  %vm335_vm2 = vweird.f32 %v369_v1  ;;  %v322_v29 = vsel %vm572_vm4, %v367_v0, %v318_v15 }
 0x137   :  { %vm336_vm6 = vmor %vm334_vm5, %vm335_vm2  ;;  %v327_v35 = vsel %vm324_vm7, %v326_v32, %v322_v29 }
 0x138   :  { %v331_v8 = vsub.f32 1.0, %v330_v3 }
 0x13a   :  { %v332_v12 = vmul.f32 %v369_v1, %v331_v8 }
 0x13c   :  { %v333_v19 = vadd.f32 %v369_v1, %v332_v12 }
 0x13e   :  { %v337_v31 = vsel %vm336_vm6, %v369_v1, %v333_v19 }
 0x13f   :  { %v342_v36 = vsel %vm339_vm8, %v341_v33, %v337_v31 }
 0x1aa   :  { %v276_v5 = vpop.f32.mrf.mxu0 }
 0x1ab   :  { %v292_v7 = vsub.f32 %v276_v5, %v286_v4 }
 0x1ad   :  { %v298_v11 = vmul.f32 2.0, %v292_v7 }
 0x1af   :  { %v300_v17 = vadd.f32 0.0009, %v298_v11 }
 0x1b1   :  { %v302_v28 = vmul.f32 %v300_v17, %v296_v20 }
 0x1b2   :  { %v279_v16 = vpop.f32.mrf.mxu0 }
 0x1b3   :  { %v293_v18 = vsub.f32 %v279_v16, %v287_v9  ;;  %v328_v37 = vmul.f32 %v327_v35, %v302_v28 }
 0x1b5   :  { %v299_v25 = vmul.f32 2.0, %v293_v18 }
 0x1b7   :  { %v301_v30 = vadd.f32 0.0009, %v299_v25 }
 0x1b9   :  { %v303_v34 = vmul.f32 %v301_v30, %v297_v27 }
 0x1bb   :  { %v343_v38 = vmul.f32 %v342_v36, %v303_v34 }
 0x1bd   :  { %v344_v39 = vadd.f32 %v343_v38, %v328_v37 }
 0x1bf   :  { %v345_v40 = vrot.slane %v344_v39, 4 }
 0x1c1   :  { %v346_v41 = vadd.f32 %v345_v40, %v344_v39 }
 0x1c3   :  { %v347_v42 = vrot.slane %v346_v41, 2 }
 0x1c5   :  { %v348_v43 = vadd.f32 %v347_v42, %v346_v41 }
 0x1c7   :  { %v349_v44 = vrot.slane %v348_v43, 1 }
 0x1c9   :  { %v350_v45 = vadd.f32 %v349_v44, %v348_v43 }
 0x1cb   :  { %351 = vst [vmem:[%s585_s4] sm:$0x1] %v350_v45 }

</bundles_post_ra>
